<compile_context>
chip_gen: v7x
topology: tpu7x:2x2x1
jax: 0.10.0
libtpu: 0.0.40
codegen_flags: <defaults>
</compile_context>

<pallas_src>
import functools

import jax
import jax.numpy as jnp
from jax.experimental import pallas as pl
from jax.experimental.pallas import tpu as pltpu

BN_EPS = 1e-5
LANE = 128
SUBLANE = 8


def _round_up(a, b):
    return (a + b - 1) // b * b


def conv_stats_kernel(x_ref, w_ref, shift_ref, y_ref, s_ref, ss_ref):
    """Conv tile (bf16 im2col matmul on the MXU) + shifted per-tile channel stats.

    x_ref:     (TM, K)  bf16 patches
    w_ref:     (K, TC)  bf16 reshaped weights
    shift_ref: (1, TC)  f32  per-channel variance shift (approx. E[y])
    y_ref:     (TM, TC) bf16 pre-BN conv output (unpadded Cout lanes)
    s_ref/ss_ref: (8, TC) f32 per-tile partial sum / sum-of-squares of (y - shift)
    """
    y = jnp.dot(x_ref[...], w_ref[...], preferred_element_type=jnp.float32)
    y_ref[...] = y.astype(y_ref.dtype)          # bf16 store (halves HBM write bytes)

    yc = y - shift_ref[...]                     # shifted sums: cancellation-safe variance
    ps = jnp.sum(yc, axis=0, keepdims=True)     # (1, TC)
    pss = jnp.sum(yc * yc, axis=0, keepdims=True)
    s_ref[...] = jnp.broadcast_to(ps, s_ref.shape)
    ss_ref[...] = jnp.broadcast_to(pss, ss_ref.shape)


@functools.partial(jax.jit, static_argnames=("alpha",))
def conv_bn_lrelu(x_nchw, weight, bias, gamma, beta, *, alpha):
    """Forward pass of ConvBNLRelu.

    x_nchw : (N, Cin, H, W); weight : (Cout, Cin, 3, 3); bias/gamma/beta : (Cout,)
    The conv bias is mathematically cancelled by the BN (train-mode) mean
    subtraction, so it is intentionally unused; output matches PyTorch exactly.
    """
    del bias
    N, Cin, H, W = x_nchw.shape
    Cout = weight.shape[0]
    Ho = (H + 2 * 1 - 3) // 2 + 1
    Wo = (W + 2 * 1 - 3) // 2 + 1

    M = N * Ho * Wo
    K = 9 * Cin

    # Keep Cout unpadded when it fits in one 128-lane block; otherwise round to
    # a multiple of 128 so it can be tiled on its own grid axis.
    Cp = Cout if Cout <= LANE else _round_up(Cout, LANE)

    # ---- per-chip VMEM budget & tile-size derivation ----
    try:
        vmem_cap = int(pltpu.get_tpu_info().vmem_capacity_bytes)
    except Exception:
        vmem_cap = 64 * 1024 * 1024          # conservative fallback (v7x-sized)
    budget = int(vmem_cap * 0.55)

    def tile_bytes(tm, tc):
        lanes_k = _round_up(K, LANE)         # in-VMEM lane padding (HBM stays unpadded)
        lanes_c = _round_up(tc, LANE)
        patches = 2 * tm * lanes_k * 2       # double-buffered bf16 patch blocks
        wght = 2 * _round_up(K, 16) * lanes_c * 2
        yout = 2 * tm * lanes_c * 2          # double-buffered bf16 conv-out blocks
        stats = 2 * 2 * SUBLANE * lanes_c * 4
        return patches + wght + yout + stats + (1 << 20)   # +1 MiB headroom

    TC = Cp
    TM = 2048
    while TM > 512 and tile_bytes(TM, TC) > budget:
        TM //= 2
    if tile_bytes(TM, TC) > budget and Cp > LANE:
        TC = LANE                            # tile Cout instead of shrinking TM further
    while TM > SUBLANE and tile_bytes(TM, TC) > budget:
        TM //= 2

    # Even-sized M blocks; keep >= 4 grid steps when the layer is big enough so
    # the two v7x TensorCores get balanced "parallel" work.
    num_m = pl.cdiv(M, TM)
    if num_m < 4 and M >= 4 * 512:
        num_m = 4
    TM = _round_up(pl.cdiv(M, num_m), SUBLANE)
    num_m = pl.cdiv(M, TM)
    Mp = num_m * TM
    num_c = Cp // TC

    vmem_limit = int(min(vmem_cap * 9 // 10,
                         max(2 * tile_bytes(TM, TC), 16 << 20)))
    compiler_params = pltpu.CompilerParams(
        dimension_semantics=("parallel", "parallel"),
        vmem_limit_bytes=vmem_limit,
    )

    # ---- glue (plain JAX, fused by XLA): NCHW -> NHWC bf16 -> pad -> im2col ----
    x = jnp.transpose(x_nchw, (0, 2, 3, 1)).astype(jnp.bfloat16)   # (N, H, W, Cin)
    xp = jnp.pad(x, ((0, 0), (1, 1), (1, 1), (0, 0)))              # (N, H+2, W+2, Cin)
    taps = [xp[:, kh:kh + 2 * Ho - 1:2, kw:kw + 2 * Wo - 1:2, :]
            for kh in range(3) for kw in range(3)]
    patches = jnp.stack(taps, axis=3).reshape(M, K)                # (M, 9*Cin) bf16
    patches = jnp.pad(patches, ((0, Mp - M), (0, 0)))              # pad M only; K unpadded

    # weight (Cout, Cin, kh, kw) -> (kh, kw, Cin, Cout) -> (9*Cin, Cp) bf16
    w2d = jnp.transpose(weight, (2, 3, 1, 0)).reshape(K, Cout)
    w2d = jnp.pad(w2d, ((0, 0), (0, Cp - Cout))).astype(jnp.bfloat16)

    # Cheap per-channel estimate of E[conv(x)] used only as a variance shift;
    # exactness is irrelevant, it just keeps the f32 sum/sum-sq well conditioned.
    x_cmean = jnp.mean(x.astype(jnp.float32), axis=(0, 1, 2))      # (Cin,)
    w_sum = jnp.sum(weight.astype(jnp.float32), axis=(2, 3))       # (Cout, Cin)
    shift_v = jnp.pad(w_sum @ x_cmean, (0, Cp - Cout))             # (Cp,) f32
    shift2d = shift_v.reshape(1, Cp)

    # ---- single Pallas pass: conv + per-tile shifted stats ----
    y_bf16, psum, psumsq = pl.pallas_call(
        conv_stats_kernel,
        out_shape=(
            jax.ShapeDtypeStruct((Mp, Cp), jnp.bfloat16),
            jax.ShapeDtypeStruct((num_m * SUBLANE, Cp), jnp.float32),
            jax.ShapeDtypeStruct((num_m * SUBLANE, Cp), jnp.float32),
        ),
        grid=(num_m, num_c),
        in_specs=[
            pl.BlockSpec((TM, K), lambda i, j: (i, 0)),
            pl.BlockSpec((K, TC), lambda i, j: (0, j)),
            pl.BlockSpec((1, TC), lambda i, j: (0, j)),
        ],
        out_specs=(
            pl.BlockSpec((TM, TC), lambda i, j: (i, j)),
            pl.BlockSpec((SUBLANE, TC), lambda i, j: (i, j)),
            pl.BlockSpec((SUBLANE, TC), lambda i, j: (i, j)),
        ),
        compiler_params=compiler_params,
    )(patches, w2d, shift2d)

    # ---- tiny per-channel reduction + BN fold (f32) ----
    sums = psum.reshape(num_m, SUBLANE, Cp)[:, 0, :].sum(axis=0)      # sum(y - shift)
    sumsqs = psumsq.reshape(num_m, SUBLANE, Cp)[:, 0, :].sum(axis=0)  # sum((y - shift)^2)
    # Zero-padded patch rows give y == 0 exactly, i.e. contribute (-shift) and
    # shift^2 per channel; remove them so stats cover exactly the true M rows.
    pad_rows = float(Mp - M)
    sums = sums + pad_rows * shift_v
    sumsqs = sumsqs - pad_rows * shift_v * shift_v
    mean_c = sums / M                                   # E[y - shift]
    var = jnp.maximum(sumsqs / M - mean_c * mean_c, 0.0)  # biased batch variance
    mean = mean_c + shift_v                             # E[y]

    gamma_p = jnp.pad(gamma.astype(jnp.float32), (0, Cp - Cout))
    beta_p = jnp.pad(beta.astype(jnp.float32), (0, Cp - Cout))
    scale = gamma_p * jax.lax.rsqrt(var + BN_EPS)
    offset = beta_p - scale * mean

    # ---- fused XLA epilogue: upcast, one FMA, LeakyReLU, reshape + NCHW ----
    z = y_bf16[:M, :Cout].astype(jnp.float32) * scale[:Cout] + offset[:Cout]
    z = jnp.where(z >= 0, z, alpha * z)
    out = z.reshape(N, Ho, Wo, Cout)
    # Kept for interface parity with the PyTorch module (NCHW output).
    return jnp.transpose(out, (0, 3, 1, 2))


def reference(x, weight, bias, gamma, beta, alpha):
    """Pure-JAX f32 reference of the PyTorch module's forward (train-mode BN)."""
    y = jax.lax.conv_general_dilated(
        x, weight, window_strides=(2, 2), padding=((1, 1), (1, 1)),
        dimension_numbers=("NCHW", "OIHW", "NCHW"))
    y = y + bias.reshape(1, -1, 1, 1)
    mean = y.mean(axis=(0, 2, 3), keepdims=True)
    var = ((y - mean) ** 2).mean(axis=(0, 2, 3), keepdims=True)
    yh = (y - mean) * jax.lax.rsqrt(var + BN_EPS)
    z = gamma.reshape(1, -1, 1, 1) * yh + beta.reshape(1, -1, 1, 1)
    return jnp.where(z >= 0, z, alpha * z)


if __name__ == "__main__":
    N, Cin, H, W = 2, 4, 16, 16
    Cout = 8
    alpha = 0.2

    key = jax.random.PRNGKey(0)
    kx, kw_, kb, kg, kbt = jax.random.split(key, 5)

    x = jax.random.normal(kx, (N, Cin, H, W), dtype=jnp.float32)
    fan_in = Cin * 3 * 3
    weight = jax.random.normal(kw_, (Cout, Cin, 3, 3), dtype=jnp.float32) / jnp.sqrt(fan_in)
    bias = 0.1 * jax.random.normal(kb, (Cout,), dtype=jnp.float32)
    gamma = 1.0 + 0.1 * jax.random.normal(kg, (Cout,), dtype=jnp.float32)
    beta = 0.1 * jax.random.normal(kbt, (Cout,), dtype=jnp.float32)

    out = conv_bn_lrelu(x, weight, bias, gamma, beta, alpha=alpha)
    jax.block_until_ready(out)
    assert out.shape == (N, Cout, H // 2, W // 2), out.shape

    # Loose tolerance: matmul operands and the conv intermediate are bf16
    # (MXU-native / HBM-traffic optimization) by design.
    ref = reference(x, weight, bias, gamma, beta, alpha)
    err = float(jnp.max(jnp.abs(out - ref)))
    assert err < 0.15, f"max abs err vs reference: {err}"
    print("KERNEL_OK")
</pallas_src>

<mosaic_0001>
module attributes {stable_mosaic.version = 11 : i64} {
  func.func @conv_stats_kernel(%arg0: i32, %arg1: i32, %arg2: memref<128x36xbf16, #tpu.memory_space<vmem>>, %arg3: memref<36x8xbf16, #tpu.memory_space<vmem>>, %arg4: memref<1x8xf32, #tpu.memory_space<vmem>>, %arg5: memref<128x8xbf16, #tpu.memory_space<vmem>>, %arg6: memref<8x8xf32, #tpu.memory_space<vmem>>, %arg7: memref<8x8xf32, #tpu.memory_space<vmem>>) attributes {dimension_semantics = [#tpu.dimension_semantics<parallel>, #tpu.dimension_semantics<parallel>], iteration_bounds = array<i64: 1, 1>, scalar_prefetch = 0 : i64, scratch_operands = 0 : i64, tpu.core_type = #tpu.core_type<tc>, window_params = [{transform_indices = @transform_0, window_bounds = array<i64: 128, 36>}, {transform_indices = @transform_1, window_bounds = array<i64: 36, 8>}, {transform_indices = @transform_2, window_bounds = array<i64: 1, 8>}, {transform_indices = @transform_3, window_bounds = array<i64: 128, 8>}, {transform_indices = @transform_4, window_bounds = array<i64: 8, 8>}, {transform_indices = @transform_5, window_bounds = array<i64: 8, 8>}]} {
    %c0 = arith.constant 0 : index
    %c0_0 = arith.constant 0 : index
    %0 = vector.load %arg2[%c0, %c0_0] : memref<128x36xbf16, #tpu.memory_space<vmem>>, vector<128x36xbf16>
    %c0_1 = arith.constant 0 : index
    %c0_2 = arith.constant 0 : index
    %1 = vector.load %arg3[%c0_1, %c0_2] : memref<36x8xbf16, #tpu.memory_space<vmem>>, vector<36x8xbf16>
    %cst = arith.constant dense<0.000000e+00> : vector<128x8xf32>
    %2 = tpu.matmul %0, %1, %cst {dimension_numbers = #tpu.dot_dimension_numbers<[1], [0], [0], [1], [0, 0, 1, 1], [], []>} : vector<128x36xbf16>, vector<36x8xbf16>, vector<128x8xf32> -> vector<128x8xf32>
    %3 = arith.truncf %2 : vector<128x8xf32> to vector<128x8xbf16>
    %c0_3 = arith.constant 0 : index
    %c0_4 = arith.constant 0 : index
    %4 = vector.load %arg5[%c0_3, %c0_4] : memref<128x8xbf16, #tpu.memory_space<vmem>>, vector<128x8xbf16>
    tpu.vector_store %arg5[%c0_3, %c0_4], %3 {strides = array<i32>} : memref<128x8xbf16, #tpu.memory_space<vmem>>, vector<128x8xbf16>,
    %c0_5 = arith.constant 0 : index
    %c0_6 = arith.constant 0 : index
    %5 = vector.load %arg4[%c0_5, %c0_6] : memref<1x8xf32, #tpu.memory_space<vmem>>, vector<1x8xf32>
    %6 = vector.broadcast %5 : vector<1x8xf32> to vector<128x8xf32>
    %7 = arith.subf %2, %6 : vector<128x8xf32>
    %cst_7 = arith.constant dense<0.000000e+00> : vector<8xf32>
    %8 = vector.multi_reduction <add>, %7, %cst_7 [0] : vector<128x8xf32> to vector<8xf32>
    %9 = vector.shape_cast %8 : vector<8xf32> to vector<1x8xf32>
    %10 = arith.mulf %7, %7 : vector<128x8xf32>
    %cst_8 = arith.constant dense<0.000000e+00> : vector<8xf32>
    %11 = vector.multi_reduction <add>, %10, %cst_8 [0] : vector<128x8xf32> to vector<8xf32>
    %12 = vector.shape_cast %11 : vector<8xf32> to vector<1x8xf32>
    %13 = vector.shape_cast %9 : vector<1x8xf32> to vector<1x8xf32>
    %14 = vector.broadcast %13 : vector<1x8xf32> to vector<8x8xf32>
    %c0_9 = arith.constant 0 : index
    %c0_10 = arith.constant 0 : index
    %15 = vector.load %arg6[%c0_9, %c0_10] : memref<8x8xf32, #tpu.memory_space<vmem>>, vector<8x8xf32>
    tpu.vector_store %arg6[%c0_9, %c0_10], %14 {strides = array<i32>} : memref<8x8xf32, #tpu.memory_space<vmem>>, vector<8x8xf32>,
    %16 = vector.shape_cast %12 : vector<1x8xf32> to vector<1x8xf32>
    %17 = vector.broadcast %16 : vector<1x8xf32> to vector<8x8xf32>
    %c0_11 = arith.constant 0 : index
    %c0_12 = arith.constant 0 : index
    %18 = vector.load %arg7[%c0_11, %c0_12] : memref<8x8xf32, #tpu.memory_space<vmem>>, vector<8x8xf32>
    tpu.vector_store %arg7[%c0_11, %c0_12], %17 {strides = array<i32>} : memref<8x8xf32, #tpu.memory_space<vmem>>, vector<8x8xf32>,
    return
  }
  func.func @transform_0(%arg0: i32, %arg1: i32) -> (i32, i32) {
    %c0_i32 = arith.constant 0 : i32
    %c0_i32_0 = arith.constant 0 : i32
    return %arg0, %c0_i32 : i32, i32
  }
  func.func @transform_1(%arg0: i32, %arg1: i32) -> (i32, i32) {
    %c0_i32 = arith.constant 0 : i32
    %c0_i32_0 = arith.constant 0 : i32
    return %c0_i32, %arg1 : i32, i32
  }
  func.func @transform_2(%arg0: i32, %arg1: i32) -> (i32, i32) {
    %c0_i32 = arith.constant 0 : i32
    %c0_i32_0 = arith.constant 0 : i32
    return %c0_i32, %arg1 : i32, i32
  }
  func.func @transform_3(%arg0: i32, %arg1: i32) -> (i32, i32) {
    %c0_i32 = arith.constant 0 : i32
    return %arg0, %arg1 : i32, i32
  }
  func.func @transform_4(%arg0: i32, %arg1: i32) -> (i32, i32) {
    %c0_i32 = arith.constant 0 : i32
    return %arg0, %arg1 : i32, i32
  }
  func.func @transform_5(%arg0: i32, %arg1: i32) -> (i32, i32) {
    %c0_i32 = arith.constant 0 : i32
    return %arg0, %arg1 : i32, i32
  }
}

</mosaic_0001>

<bundles_post_ra>
// kernel: conv_bn_lrelu.1
= control target key start
LH: loop header
LB: loop body
LE: loop exit
PB: predicated region body
PF: predicated region fallthrough
CT: control target
= control target key end

     0   :  { %vm94_vm0 = vcmask 293888   ;;  %vm119_vm1 = vcmask 1041408   ;;  %vm284_vm2 = vcmask 60416   ;;  %vm324_vm3 = vcmask 64512   ;;  %s754_s1 = inlined_call_operand.vmem [shape: bf16[36,8], index: 1, kind: input, shape index: {}]   ;;  %s755_s0 = inlined_call_operand.vmem [shape: bf16[128,36], index: 0, kind: input, shape index: {}]   ;;  %s756_s2 = inlined_call_operand.vmem [shape: f32[1,8], index: 2, kind: input, shape index: {}]   ;;  %s757_s3 = inlined_call_operand.vmem [shape: bf16[128,8], index: 3, kind: output, shape index: {0}]   ;;  %s758_s4 = inlined_call_operand.vmem [shape: f32[8,8], index: 4, kind: output, shape index: {1}]   ;;  %s759_s5 = inlined_call_operand.vmem [shape: f32[8,8], index: 5, kind: output, shape index: {2}]  }
   0x1   :  { %v522_v0 = vld [vmem:[%s754_s1] sm:$0xff]   ;;  %v523_v1 = vld [vmem:[%s754_s1 + $0x8] sm:$0xff]   ;;  %v524_v2 = vld [vmem:[%s754_s1 + $0x10] ss:$0 sps:$4 sm:$0x33]  }
   0x2   :  { %492 = vmatprep.subr.bf16.mxu0 %v522_v0  ;;  %v525_v3 = vld [vmem:[%s755_s0] sm:$0xff]   ;;  %514 = vmatprep.subr.bf16.mxu1 %v522_v0  ;;  %v121_v5 = vsel %vm119_vm1, %v524_v2, 0  ;;  %v526_v6 = vld [vmem:[%s755_s0 + $0x8] sm:$0xff]   ;;  %v527_v8 = vld [vmem:[%s755_s0 + $0x10] sm:$0xff]  }
   0x3   :  { %493 = vmatpush3.bf16.msra.mxu0 %v522_v0  ;;  %517 = vmatpush3.bf16.msra.mxu1 %v522_v0  ;;  %v529_v4 = vld [vmem:[%s755_s0 + $0x20] sm:$0xff]   ;;  %v530_v7 = vld [vmem:[%s755_s0 + $0x28] sm:$0xff]   ;;  %v531_v9 = vld [vmem:[%s755_s0 + $0x30] sm:$0xff]  }
   0x4   :  { %494 = vmatprep.subr.bf16.mxu0 %v523_v1  ;;  %498 = vmatprep.mubr.msk.bf16.mxu0 %vm94_vm0, %v525_v3  ;;  %v528_v10 = vld [vmem:[%s755_s0 + $0x18] sm:$0xff]   ;;  %v607_v12 = vld [vmem:[%s756_s2] ss:$0 sm:$0xff] }
   0x5   :  { %515 = vmatprep.subr.bf16.mxu1 %v523_v1  ;;  %506 = vmatprep.mubr.msk.bf16.mxu1 %vm94_vm0, %v529_v4  ;;  %v532_v11 = vld [vmem:[%s755_s0 + $0x38] sm:$0xff]  }
   0x7   :  { %495 = vmatpush3.bf16.msra.mxu0 %v523_v1  ;;  %518 = vmatpush3.bf16.msra.mxu1 %v523_v1 }
   0x8   :  { %520 = vmatprep.subr.msk.bf16.mxu0 %vm119_vm1, %v524_v2  ;;  %521 = vmatprep.subr.msk.bf16.mxu1 %vm119_vm1, %v524_v2 }
   0xb   :  { %497 = vmatpush3.bf16.msra.mxu0 %v121_v5  ;;  %519 = vmatpush3.bf16.msra.mxu1 %v121_v5 }
   0xe   :  { %499 = vmatmul.mubr.msk.bf16.vlgmr.msra.gmra.mrb[0].mxu0 %vm94_vm0, %v526_v6  ;;  %507 = vmatmul.mubr.msk.bf16.vlgmr.msra.gmra.mrb[0].mxu1 %vm94_vm0, %v530_v7 }
   0xf   :  { %502 = vmatprep.mubr.msk.bf16.mxu0 %vm94_vm0, %v527_v8  ;;  %510 = vmatprep.mubr.msk.bf16.mxu1 %vm94_vm0, %v531_v9 }
  0x16   :  { %503 = vmatmul.mubr.msk.bf16.gmra.mrb[4].mxu0 %vm94_vm0, %v528_v10  ;;  %511 = vmatmul.mubr.msk.bf16.gmra.mrb[4].mxu1 %vm94_vm0, %v532_v11 }
  0xe1   :  { %v500_v13 = vpop.f32.mrb[0].mxu0  ;;  %v609_v14 = vpop.f32.mrb[0].mxu1 }
  0xe2   :  { %v467_v15 = vpack.c.bf16 %v500_v13, %v500_v13  ;;  %v157_v16 = vpop.f32.mrb[1].mxu0  ;;  %v475_v17 = vpack.c.bf16 %v609_v14, %v609_v14  ;;  %v189_v18 = vpop.f32.mrb[1].mxu1  ;;  %v310_v19 = vsub.f32 %v500_v13, %v607_v12 }
  0xe3   :  { %v465_v20 = vpack.c.bf16 %v157_v16, %v157_v16  ;;  %v308_v21 = vsub.f32 %v157_v16, %v607_v12  ;;  %v501_v22 = vpop.f32.mrb[2].mxu0  ;;  %v473_v23 = vpack.c.bf16 %v189_v18, %v189_v18  ;;  %v615_v24 = vpop.f32.mrb[2].mxu1  ;;  %v316_v3 = vsub.f32 %v189_v18, %v607_v12 }
  0xe4   :  { %287 = vst.msk [vmem:[%s757_s3 + $0x8] sm:$0xf] %vm284_vm2, %v467_v15  ;;  %v468_v25 = vpack.c.bf16 %v501_v22, %v501_v22  ;;  %v311_v26 = vsub.f32 %v501_v22, %v607_v12  ;;  %v160_v27 = vpop.f32.mrb[3].mxu0  ;;  %295 = vst.msk [vmem:[%s757_s3 + $0x28] sm:$0xf] %vm284_vm2, %v475_v17  ;;  %v626_v28 = vpop.f32.mrb[3].mxu1  ;;  %v364_v32 = vmul.f32 %v310_v19, %v310_v19 }
  0xe5   :  { %285 = vst.msk [vmem:[%s757_s3] sm:$0xf] %vm284_vm2, %v465_v20  ;;  %v362_v29 = vmul.f32 %v308_v21, %v308_v21  ;;  %v466_v30 = vpack.c.bf16 %v160_v27, %v160_v27  ;;  %v309_v31 = vsub.f32 %v160_v27, %v607_v12  ;;  %293 = vst.msk [vmem:[%s757_s3 + $0x20] sm:$0xf] %vm284_vm2, %v473_v23  ;;  %v325_v33 = vsel %vm324_vm3, %v308_v21, 0.0 }
  0xe6   :  { %288 = vst.msk [vmem:[%s757_s3 + $0xc] sm:$0xf] %vm284_vm2, %v468_v25  ;;  %v365_v36 = vmul.f32 %v311_v26, %v311_v26  ;;  %v328_v38 = vsel %vm324_vm3, %v310_v19, 0.0  ;;  %v476_v42 = vpack.c.bf16 %v615_v24, %v615_v24  ;;  %v381_v49 = vsel %vm324_vm3, %v364_v32, 0.0 }
  0xe7   :  { %286 = vst.msk [vmem:[%s757_s3 + $0x4] sm:$0xf] %vm284_vm2, %v466_v30  ;;  %v326_v34 = vsel %vm324_vm3, %v309_v31, 0.0  ;;  %v363_v35 = vmul.f32 %v309_v31, %v309_v31  ;;  %v378_v39 = vsel %vm324_vm3, %v362_v29, 0.0  ;;  %v330_v50 = vsel %vm324_vm3, %v311_v26, 0.0 }
  0xe8   :  { %v327_v37 = vadd.f32 %v326_v34, %v325_v33  ;;  %296 = vst.msk [vmem:[%s757_s3 + $0x2c] sm:$0xf] %vm284_vm2, %v476_v42  ;;  %v383_v55 = vsel %vm324_vm3, %v365_v36, 0.0  ;;  %v474_v8 = vpack.c.bf16 %v626_v28, %v626_v28  ;;  %v370_v17 = vmul.f32 %v316_v3, %v316_v3 }
  0xe9   :  { %v379_v40 = vsel %vm324_vm3, %v363_v35, 0.0  ;;  %v504_v41 = vpop.f32.mrb[4].mxu0  ;;  %v652_v43 = vpop.f32.mrb[4].mxu1  ;;  %v317_v20 = vsub.f32 %v626_v28, %v607_v12  ;;  %v318_v29 = vsub.f32 %v609_v14, %v607_v12  ;;  %v340_v28 = vsel %vm324_vm3, %v316_v3, 0.0 }
  0xea   :  { %v329_v44 = vadd.f32 %v328_v38, %v327_v37  ;;  %v380_v45 = vadd.f32 %v379_v40, %v378_v39  ;;  %v471_v46 = vpack.c.bf16 %v504_v41, %v504_v41  ;;  %v173_v47 = vpop.f32.mrb[5].mxu0  ;;  %v205_v48 = vpop.f32.mrb[5].mxu1  ;;  %v314_v60 = vsub.f32 %v504_v41, %v607_v12  ;;  %294 = vst.msk [vmem:[%s757_s3 + $0x24] sm:$0xf] %vm284_vm2, %v474_v8 }
  0xeb   :  { %v469_v51 = vpack.c.bf16 %v173_v47, %v173_v47  ;;  %v312_v52 = vsub.f32 %v173_v47, %v607_v12  ;;  %v505_v53 = vpop.f32.mrb[6].mxu0  ;;  %v661_v54 = vpop.f32.mrb[6].mxu1  ;;  %v479_v13 = vpack.c.bf16 %v652_v43, %v652_v43  ;;  %v477_v21 = vpack.c.bf16 %v205_v48, %v205_v48 }
  0xec   :  { %v382_v56 = vadd.f32 %v381_v49, %v380_v45  ;;  %291 = vst.msk [vmem:[%s757_s3 + $0x18] sm:$0xf] %vm284_vm2, %v471_v46  ;;  %v331_v57 = vadd.f32 %v330_v50, %v329_v44  ;;  %v176_v58 = vpop.f32.mrb[7].mxu0  ;;  %v208_v59 = vpop.f32.mrb[7].mxu1  ;;  %v472_v63 = vpack.c.bf16 %v505_v53, %v505_v53  ;;  %v315_v5 = vsub.f32 %v505_v53, %v607_v12 }
  0xed   :  { %289 = vst.msk [vmem:[%s757_s3 + $0x10] sm:$0xf] %vm284_vm2, %v469_v51  ;;  %v332_v61 = vsel %vm324_vm3, %v312_v52, 0.0  ;;  %v366_v62 = vmul.f32 %v312_v52, %v312_v52  ;;  %v470_v2 = vpack.c.bf16 %v176_v58, %v176_v58  ;;  %v313_v6 = vsub.f32 %v176_v58, %v607_v12  ;;  %299 = vst.msk [vmem:[%s757_s3 + $0x38] sm:$0xf] %vm284_vm2, %v479_v13 }
  0xee   :  { %v333_v0 = vadd.f32 %v332_v61, %v331_v57  ;;  %v384_v1 = vadd.f32 %v383_v55, %v382_v56  ;;  %292 = vst.msk [vmem:[%s757_s3 + $0x1c] sm:$0xf] %vm284_vm2, %v472_v63  ;;  %v368_v9 = vmul.f32 %v314_v60, %v314_v60  ;;  %v336_v15 = vsel %vm324_vm3, %v314_v60, 0.0  ;;  %297 = vst.msk [vmem:[%s757_s3 + $0x30] sm:$0xf] %vm284_vm2, %v477_v21 }
  0xef   :  { %v385_v4 = vsel %vm324_vm3, %v366_v62, 0.0  ;;  %290 = vst.msk [vmem:[%s757_s3 + $0x14] sm:$0xf] %vm284_vm2, %v470_v2  ;;  %v334_v10 = vsel %vm324_vm3, %v313_v6, 0.0  ;;  %v367_v11 = vmul.f32 %v313_v6, %v313_v6  ;;  %v369_v18 = vmul.f32 %v315_v5, %v315_v5 }
  0xf0   :  { %v386_v7 = vadd.f32 %v385_v4, %v384_v1  ;;  %v335_v16 = vadd.f32 %v334_v10, %v333_v0  ;;  %v480_v25 = vpack.c.bf16 %v661_v54, %v661_v54  ;;  %v389_v26 = vsel %vm324_vm3, %v368_v9, 0.0 }
  0xf1   :  { %v387_v19 = vsel %vm324_vm3, %v367_v11, 0.0  ;;  %v338_v27 = vsel %vm324_vm3, %v315_v5, 0.0  ;;  %v319_v32 = vsub.f32 %v615_v24, %v607_v12  ;;  %v478_v33 = vpack.c.bf16 %v208_v59, %v208_v59 }
  0xf2   :  { %v337_v22 = vadd.f32 %v336_v15, %v335_v16  ;;  %v388_v23 = vadd.f32 %v387_v19, %v386_v7  ;;  %300 = vst.msk [vmem:[%s757_s3 + $0x3c] sm:$0xf] %vm284_vm2, %v480_v25  ;;  %v391_v14 = vsel %vm324_vm3, %v369_v18, 0.0  ;;  %v393_v34 = vsel %vm324_vm3, %v370_v17, 0.0 }
  0xf3   :  { %v371_v35 = vmul.f32 %v317_v20, %v317_v20  ;;  %v320_v36 = vsub.f32 %v205_v48, %v607_v12  ;;  %298 = vst.msk [vmem:[%s757_s3 + $0x34] sm:$0xf] %vm284_vm2, %v478_v33  ;;  %v372_v24 = vmul.f32 %v318_v29, %v318_v29  ;;  %v342_v39 = vsel %vm324_vm3, %v317_v20, 0.0 }
  0xf4   :  { %v390_v30 = vadd.f32 %v389_v26, %v388_v23  ;;  %v339_v31 = vadd.f32 %v338_v27, %v337_v22  ;;  %v344_v40 = vsel %vm324_vm3, %v318_v29, 0.0  ;;  %v373_v44 = vmul.f32 %v319_v32, %v319_v32 }
  0xf5   :  { %v395_v45 = vsel %vm324_vm3, %v371_v35, 0.0  ;;  %v374_v46 = vmul.f32 %v320_v36, %v320_v36  ;;  %v321_v47 = vsub.f32 %v208_v59, %v607_v12  ;;  %v397_v50 = vsel %vm324_vm3, %v372_v24, 0.0 }
  0xf6   :  { %v341_v37 = vadd.f32 %v340_v28, %v339_v31  ;;  %v392_v38 = vadd.f32 %v391_v14, %v390_v30  ;;  %v346_v51 = vsel %vm324_vm3, %v319_v32, 0.0  ;;  %v322_v52 = vsub.f32 %v652_v43, %v607_v12 }
  0xf7   :  { %v348_v53 = vsel %vm324_vm3, %v320_v36, 0.0  ;;  %v399_v57 = vsel %vm324_vm3, %v373_v44, 0.0  ;;  %v401_v58 = vsel %vm324_vm3, %v374_v46, 0.0  ;;  %v323_v59 = vsub.f32 %v661_v54, %v607_v12 }
  0xf8   :  { %v394_v41 = vadd.f32 %v393_v34, %v392_v38  ;;  %v343_v42 = vadd.f32 %v342_v39, %v341_v37  ;;  %v375_v60 = vmul.f32 %v321_v47, %v321_v47  ;;  %v376_v63 = vmul.f32 %v322_v52, %v322_v52 }
  0xf9   :  { %v350_v0 = vsel %vm324_vm3, %v321_v47, 0.0  ;;  %v352_v43 = vsel %vm324_vm3, %v322_v52, 0.0  ;;  %v377_v3 = vmul.f32 %v323_v59, %v323_v59  ;;  %v354_v8 = vsel %vm324_vm3, %v323_v59, 0.0 }
  0xfa   :  { %v345_v48 = vadd.f32 %v344_v40, %v343_v42  ;;  %v396_v49 = vadd.f32 %v395_v45, %v394_v41  ;;  %v403_v4 = vsel %vm324_vm3, %v375_v60, 0.0  ;;  %v405_v7 = vsel %vm324_vm3, %v376_v63, 0.0 }
  0xfb   :  { %v407_v9 = vsel %vm324_vm3, %v377_v3, 0.0 }
  0xfc   :  { %v398_v55 = vadd.f32 %v397_v50, %v396_v49  ;;  %v347_v56 = vadd.f32 %v346_v51, %v345_v48 }
  0xfe   :  { %v349_v61 = vadd.f32 %v348_v53, %v347_v56  ;;  %v400_v62 = vadd.f32 %v399_v57, %v398_v55 }
 0x100   :  { %v402_v1 = vadd.f32 %v401_v58, %v400_v62  ;;  %v351_v2 = vadd.f32 %v350_v0, %v349_v61 }
 0x102   :  { %v353_v5 = vadd.f32 %v352_v43, %v351_v2  ;;  %v404_v6 = vadd.f32 %v403_v4, %v402_v1 }
 0x104   :  { %v355_v12 = vadd.f32 %v354_v8, %v353_v5  ;;  %v406_v54 = vadd.f32 %v405_v7, %v404_v6 }
 0x106   :  { %v356_v10 = vrot.slane %v355_v12, 4  ;;  %v408_v11 = vadd.f32 %v407_v9, %v406_v54 }
 0x108   :  { %v357_v13 = vadd.f32 %v356_v10, %v355_v12  ;;  %v409_v15 = vrot.slane %v408_v11, 4 }
 0x10a   :  { %v358_v16 = vrot.slane %v357_v13, 2  ;;  %v410_v17 = vadd.f32 %v409_v15, %v408_v11 }
 0x10c   :  { %v359_v18 = vadd.f32 %v358_v16, %v357_v13  ;;  %v411_v19 = vrot.slane %v410_v17, 2 }
 0x10e   :  { %v360_v20 = vrot.slane %v359_v18, 1  ;;  %v412_v21 = vadd.f32 %v411_v19, %v410_v17 }
 0x110   :  { %v361_v22 = vadd.f32 %v360_v20, %v359_v18  ;;  %v413_v23 = vrot.slane %v412_v21, 1 }
 0x112   :  { %v414_v25 = vadd.f32 %v413_v23, %v412_v21  ;;  %415 = vst.msk [vmem:[%s758_s4] sm:$0xff] %vm324_vm3, %v361_v22 }
 0x114   :  { %416 = vst.msk [vmem:[%s759_s5] sm:$0xff] %vm324_vm3, %v414_v25 }

</bundles_post_ra>
